<compile_context>
chip_gen: v7x
topology: tpu7x:2x2x1
jax: 0.10.0
libtpu: 0.0.40
codegen_flags: <defaults>
</compile_context>

<pallas_src>
import jax
import jax.numpy as jnp
from jax.experimental import pallas as pl
from jax.experimental.pallas import tpu as pltpu

IN_DIM = 784
HID_DIM = 512
OUT_DIM = 10
OUT_PAD = 128          # lane-dense padded output width (multiple of 128)
DEFAULT_BATCH_TILE = 1024


def fc_kernel(x_ref, w1_ref, b1_ref, w2_ref, b2_ref, o_ref):
    # x_ref:  (TB, 784)  f32       w1_ref: (784, 512) bf16    b1_ref: (1, 512) f32
    # w2_ref: (512, 128) bf16 pad  b2_ref: (1, 128)   f32 pad o_ref:  (TB, 128) f32
    x = x_ref[...].astype(jnp.bfloat16)          # in-kernel cast: no extra HBM pass
    h = jnp.dot(x, w1_ref[...], preferred_element_type=jnp.float32)
    h = jnp.maximum(h + b1_ref[...], 0.0)        # bias + ReLU in f32
    y = jnp.dot(h.astype(jnp.bfloat16), w2_ref[...],
                preferred_element_type=jnp.float32)
    o_ref[...] = y + b2_ref[...]                 # lane-dense f32 store


def _pick_batch_tile(B, batch_tile):
    """Batch tile: multiple of 8 (or == B), >=2 grid steps when B is big enough."""
    if B <= 8:
        return B                                  # single tile == full batch dim
    tb = min(batch_tile, B)
    if tb >= B:
        # A single tile would cover the whole batch: split ~in half (rounded up
        # to a multiple of 8) so the "parallel" grid axis feeds both v7x TCs.
        tb = min(B, max(8, (((B + 1) // 2 + 7) // 8) * 8))
    else:
        tb = max(8, (tb // 8) * 8)
    return tb


def fc_forward(data, w1, b1, w2, b2, *, batch_tile=DEFAULT_BATCH_TILE):
    """data: (B, C, H, W); w1: (784, 512); b1: (512,); w2: (512, 10); b2: (10,).

    Returns (B, 10) float32, matching the PyTorch FC module forward.
    """
    B = data.shape[0]
    x = data.reshape(B, -1).astype(jnp.float32)   # torch: data.view(B, -1).float()

    # Weights in bf16 for native MXU rate; biases stay f32.
    w1b = w1.astype(jnp.bfloat16)
    w2p = jnp.pad(w2.astype(jnp.bfloat16), ((0, 0), (0, OUT_PAD - OUT_DIM)))
    b1r = b1.reshape(1, HID_DIM).astype(jnp.float32)
    b2p = jnp.pad(b2.reshape(1, OUT_DIM).astype(jnp.float32),
                  ((0, 0), (0, OUT_PAD - OUT_DIM)))

    tb = _pick_batch_tile(B, batch_tile)
    nb = pl.cdiv(B, tb)   # ragged last tile masked by Pallas -> no jnp.pad copy

    cost = pl.CostEstimate(
        flops=2 * B * (IN_DIM * HID_DIM + HID_DIM * OUT_PAD),
        transcendentals=0,
        bytes_accessed=(x.size * 4 + w1b.size * 2 + w2p.size * 2
                        + b1r.size * 4 + b2p.size * 4 + B * OUT_PAD * 4),
    )

    out = pl.pallas_call(
        fc_kernel,
        out_shape=jax.ShapeDtypeStruct((B, OUT_PAD), jnp.float32),
        grid_spec=pltpu.PrefetchScalarGridSpec(
            num_scalar_prefetch=0,
            grid=(nb,),
            in_specs=[
                pl.BlockSpec((tb, IN_DIM), lambda i: (i, 0)),        # x tile (f32)
                pl.BlockSpec((IN_DIM, HID_DIM), lambda i: (0, 0)),   # w1 resident
                pl.BlockSpec((1, HID_DIM), lambda i: (0, 0)),        # b1 resident
                pl.BlockSpec((HID_DIM, OUT_PAD), lambda i: (0, 0)),  # w2 resident
                pl.BlockSpec((1, OUT_PAD), lambda i: (0, 0)),        # b2 resident
            ],
            out_specs=pl.BlockSpec((tb, OUT_PAD), lambda i: (i, 0)),
        ),
        compiler_params=pltpu.CompilerParams(
            dimension_semantics=("parallel",),     # shard batch grid over v7x TCs
            vmem_limit_bytes=32 * 1024 * 1024,     # v5e default is 16 MiB; raise it
        ),
        cost_estimate=cost,
    )(x, w1b, b1r, w2p, b2p)

    # Lane-dim slice back to the module's (B, 10) contract.
    return out[:, :OUT_DIM]


def init_params(key):
    """Deterministic init mirroring nn.Linear's U(-1/sqrt(fan_in), 1/sqrt(fan_in))."""
    k1, k2, k3, k4 = jax.random.split(key, 4)
    bound1 = 1.0 / jnp.sqrt(float(IN_DIM))
    bound2 = 1.0 / jnp.sqrt(float(HID_DIM))
    # Stored as (in, out): transpose of PyTorch's (out, in) weight layout.
    w1 = jax.random.uniform(k1, (IN_DIM, HID_DIM), jnp.float32, -bound1, bound1)
    b1 = jax.random.uniform(k2, (HID_DIM,), jnp.float32, -bound1, bound1)
    w2 = jax.random.uniform(k3, (HID_DIM, OUT_DIM), jnp.float32, -bound2, bound2)
    b2 = jax.random.uniform(k4, (OUT_DIM,), jnp.float32, -bound2, bound2)
    return w1, b1, w2, b2


if __name__ == "__main__":
    key = jax.random.PRNGKey(0)
    pkey, dkey = jax.random.split(key)

    w1, b1, w2, b2 = init_params(pkey)
    # MNIST-like input: (batch=2, channels=1, 28, 28) -> flattens to 784.
    data = jax.random.normal(dkey, (2, 1, 28, 28), dtype=jnp.float32)

    out = jax.block_until_ready(fc_forward(data, w1, b1, w2, b2))

    # Reference with the same bf16-input / f32-accumulation math as the kernel.
    x_ref = data.reshape(2, -1).astype(jnp.bfloat16)
    h_ref = jnp.maximum(
        jnp.dot(x_ref, w1.astype(jnp.bfloat16),
                preferred_element_type=jnp.float32) + b1.reshape(1, -1), 0.0)
    ref = jnp.dot(h_ref.astype(jnp.bfloat16), w2.astype(jnp.bfloat16),
                  preferred_element_type=jnp.float32) + b2.reshape(1, -1)

    assert out.shape == (2, 10)
    assert jnp.allclose(out, ref, atol=5e-3, rtol=5e-3)

    print("KERNEL_OK")
</pallas_src>

<mosaic_0001>
module attributes {stable_mosaic.version = 11 : i64} {
  func.func @fc_kernel(%arg0: i32, %arg1: memref<2x784xf32, #tpu.memory_space<vmem>>, %arg2: memref<784x512xbf16, #tpu.memory_space<vmem>>, %arg3: memref<1x512xf32, #tpu.memory_space<vmem>>, %arg4: memref<512x128xbf16, #tpu.memory_space<vmem>>, %arg5: memref<1x128xf32, #tpu.memory_space<vmem>>, %arg6: memref<2x128xf32, #tpu.memory_space<vmem>>) attributes {dimension_semantics = [#tpu.dimension_semantics<parallel>], iteration_bounds = array<i64: 1>, scalar_prefetch = 0 : i64, scratch_operands = 0 : i64, tpu.core_type = #tpu.core_type<tc>, window_params = [{transform_indices = @transform_0, window_bounds = array<i64: 2, 784>}, {pipeline_mode = #tpu.pipeline_mode<synchronous>, transform_indices = @transform_1, window_bounds = array<i64: 784, 512>}, {pipeline_mode = #tpu.pipeline_mode<synchronous>, transform_indices = @transform_2, window_bounds = array<i64: 1, 512>}, {pipeline_mode = #tpu.pipeline_mode<synchronous>, transform_indices = @transform_3, window_bounds = array<i64: 512, 128>}, {pipeline_mode = #tpu.pipeline_mode<synchronous>, transform_indices = @transform_4, window_bounds = array<i64: 1, 128>}, {transform_indices = @transform_5, window_bounds = array<i64: 2, 128>}]} {
    %c0 = arith.constant 0 : index
    %c0_0 = arith.constant 0 : index
    %0 = vector.load %arg1[%c0, %c0_0] : memref<2x784xf32, #tpu.memory_space<vmem>>, vector<2x784xf32>
    %1 = arith.truncf %0 : vector<2x784xf32> to vector<2x784xbf16>
    %c0_1 = arith.constant 0 : index
    %c0_2 = arith.constant 0 : index
    %2 = vector.load %arg2[%c0_1, %c0_2] : memref<784x512xbf16, #tpu.memory_space<vmem>>, vector<784x512xbf16>
    %cst = arith.constant dense<0.000000e+00> : vector<2x512xf32>
    %3 = tpu.matmul %1, %2, %cst {dimension_numbers = #tpu.dot_dimension_numbers<[1], [0], [0], [1], [0, 0, 1, 1], [], []>} : vector<2x784xbf16>, vector<784x512xbf16>, vector<2x512xf32> -> vector<2x512xf32>
    %c0_3 = arith.constant 0 : index
    %c0_4 = arith.constant 0 : index
    %4 = vector.load %arg3[%c0_3, %c0_4] : memref<1x512xf32, #tpu.memory_space<vmem>>, vector<1x512xf32>
    %5 = vector.broadcast %4 : vector<1x512xf32> to vector<2x512xf32>
    %6 = arith.addf %3, %5 : vector<2x512xf32>
    %cst_5 = arith.constant 0.000000e+00 : f32
    %7 = vector.broadcast %cst_5 : f32 to vector<2x512xf32>
    %8 = arith.maximumf %6, %7 : vector<2x512xf32>
    %9 = arith.truncf %8 : vector<2x512xf32> to vector<2x512xbf16>
    %c0_6 = arith.constant 0 : index
    %c0_7 = arith.constant 0 : index
    %10 = vector.load %arg4[%c0_6, %c0_7] : memref<512x128xbf16, #tpu.memory_space<vmem>>, vector<512x128xbf16>
    %cst_8 = arith.constant dense<0.000000e+00> : vector<2x128xf32>
    %11 = tpu.matmul %9, %10, %cst_8 {dimension_numbers = #tpu.dot_dimension_numbers<[1], [0], [0], [1], [0, 0, 1, 1], [], []>} : vector<2x512xbf16>, vector<512x128xbf16>, vector<2x128xf32> -> vector<2x128xf32>
    %c0_9 = arith.constant 0 : index
    %c0_10 = arith.constant 0 : index
    %12 = vector.load %arg5[%c0_9, %c0_10] : memref<1x128xf32, #tpu.memory_space<vmem>>, vector<1x128xf32>
    %13 = vector.broadcast %12 : vector<1x128xf32> to vector<2x128xf32>
    %14 = arith.addf %11, %13 : vector<2x128xf32>
    %c0_11 = arith.constant 0 : index
    %c0_12 = arith.constant 0 : index
    %15 = vector.load %arg6[%c0_11, %c0_12] : memref<2x128xf32, #tpu.memory_space<vmem>>, vector<2x128xf32>
    tpu.vector_store %arg6[%c0_11, %c0_12], %14 {strides = array<i32>} : memref<2x128xf32, #tpu.memory_space<vmem>>, vector<2x128xf32>,
    return
  }
  func.func @transform_0(%arg0: i32) -> (i32, i32) {
    %c0_i32 = arith.constant 0 : i32
    %c0_i32_0 = arith.constant 0 : i32
    return %arg0, %c0_i32 : i32, i32
  }
  func.func @transform_1(%arg0: i32) -> (i32, i32) {
    %c0_i32 = arith.constant 0 : i32
    %c0_i32_0 = arith.constant 0 : i32
    %c0_i32_1 = arith.constant 0 : i32
    return %c0_i32, %c0_i32_0 : i32, i32
  }
  func.func @transform_2(%arg0: i32) -> (i32, i32) {
    %c0_i32 = arith.constant 0 : i32
    %c0_i32_0 = arith.constant 0 : i32
    %c0_i32_1 = arith.constant 0 : i32
    return %c0_i32, %c0_i32_0 : i32, i32
  }
  func.func @transform_3(%arg0: i32) -> (i32, i32) {
    %c0_i32 = arith.constant 0 : i32
    %c0_i32_0 = arith.constant 0 : i32
    %c0_i32_1 = arith.constant 0 : i32
    return %c0_i32, %c0_i32_0 : i32, i32
  }
  func.func @transform_4(%arg0: i32) -> (i32, i32) {
    %c0_i32 = arith.constant 0 : i32
    %c0_i32_0 = arith.constant 0 : i32
    %c0_i32_1 = arith.constant 0 : i32
    return %c0_i32, %c0_i32_0 : i32, i32
  }
  func.func @transform_5(%arg0: i32) -> (i32, i32) {
    %c0_i32 = arith.constant 0 : i32
    %c0_i32_0 = arith.constant 0 : i32
    return %arg0, %c0_i32 : i32, i32
  }
}

</mosaic_0001>

<bundles_post_ra>
// kernel: tpu_custom_call.1
= control target key start
LH: loop header
LB: loop body
LE: loop exit
PB: predicated region body
PF: predicated region fallthrough
CT: control target
= control target key end

     0   :  { %10 = vsyncpa [#allocation3], 0  ;;  %s2869_s0 = inlined_call_operand.hbm [shape: f32[2,784], index: 0, kind: input, shape index: {}]   ;;  %s2870_s1 = inlined_call_operand.hbm [shape: bf16[784,512], index: 1, kind: input, shape index: {}]   ;;  %s2871_s2 = inlined_call_operand.vmem [shape: f32[1,512], index: 2, kind: input, shape index: {}]   ;;  %s2872_s3 = inlined_call_operand.hbm [shape: bf16[512,128], index: 3, kind: input, shape index: {}]   ;;  %s2873_s4 = inlined_call_operand.vmem [shape: f32[1,128], index: 4, kind: input, shape index: {}]   ;;  %s2874_s5 = inlined_call_operand.hbm [shape: f32[2,128], index: 5, kind: output, shape index: {}]  }
   0x1   :  { %11 = vsyncpa [#allocation6], 0 }
   0x2   :  { %12 = vsyncpa [#allocation4], 0  ;;  %s2745_s18 = smov [#allocation5]   ;;  %s2651_s22 = scalar_lea.hbm %s2870_s1, 25088 }
   0x3   :  { %s28_s19 = sshll.u32 %s2745_s18, 4  ;;  %p2652_p0 = scmp.ne.s32.totalorder %s2870_s1, %s2651_s22  ;;  %s29_s19 = int_to_ptr.vmem [resolvable:$true] %s28_s19 }
   0x4   :  { %p2655_p1 = scmp.lt.u32.totalorder %s2651_s22, %s2870_s1 }
   0x6   :  { %p2657_p2 = pnand %p2655_p1, %p2652_p0 }
   0x8   :  { %2660 = shalt.err (!%p2657_p2)
}
   0x9   :  { %s2661_s27 = scalar_lea.vmem %s29_s19, 25088  ;;  %p2666_p4 = scmp.lt.s32.totalorder %s29_s19, %s29_s19 }
   0xa   :  { %p2662_p3 = scmp.ne.s32.totalorder %s29_s19, %s2661_s27  ;;  %p2667_p5 = scmp.lt.s32.totalorder %s2661_s27, %s2661_s27 }
   0xc   :  { %p2668_p6 = por %p2667_p5, %p2666_p4 }
   0xe   :  { %p2669_p7 = pnand %p2668_p6, %p2662_p3 }
  0x10   :  { %2672 = shalt.err (!%p2669_p7)
}
  0x11   :  { %s2746_s28 = smov 256   ;;  %s2747_s29 = smov 16  }
  0x12   :  { %34 = dma.hbm_to_vmem [thread:$0]  %s2870_s1, 25088, %s29_s19, [#allocation6], %s2746_s28, %s2746_s28, %s2747_s29  }
  0x13   :  { %s2748_s7 = smov [#allocation2]   ;;  %s2749_s9 = smov [#allocation7]  }
  0x14   :  { %s19_s8 = sshll.u32 %s2748_s7, 4  ;;  %s42_s10 = sshll.u32 %s2749_s9, 4  ;;  %s20_s8 = int_to_ptr.vmem [resolvable:$true] %s19_s8  ;;  %s43_s10 = int_to_ptr.vmem [resolvable:$true] %s42_s10 }
  0x15   :  { %s2673_s13 = scalar_lea.hbm %s2869_s0, 224 }
  0x16   :  { %p2674_p8 = scmp.ne.s32.totalorder %s2869_s0, %s2673_s13  ;;  %p2677_p9 = scmp.lt.u32.totalorder %s2673_s13, %s2869_s0 }
  0x18   :  { %p2679_p10 = pnand %p2677_p9, %p2674_p8 }
  0x1a   :  { %2682 = shalt.err (!%p2679_p10)
}
  0x1b   :  { %s2683_s1 = scalar_lea.vmem %s20_s8, 224  ;;  %p2688_p12 = scmp.lt.s32.totalorder %s20_s8, %s20_s8 }
  0x1c   :  { %p2684_p11 = scmp.ne.s32.totalorder %s20_s8, %s2683_s1  ;;  %p2689_p13 = scmp.lt.s32.totalorder %s2683_s1, %s2683_s1 }
  0x1e   :  { %p2690_p0 = por %p2689_p13, %p2688_p12 }
  0x20   :  { %p2691_p1 = pnand %p2690_p0, %p2684_p11 }
  0x22   :  { %2694 = shalt.err (!%p2691_p1)
}
  0x23   :  { %22 = dma.hbm_to_vmem [thread:$0]  %s2869_s0, 224, %s20_s8, [#allocation3]  }
  0x24   :  { %s2695_s22 = scalar_lea.hbm %s2872_s3, 4096 }
  0x25   :  { %p2696_p2 = scmp.ne.s32.totalorder %s2872_s3, %s2695_s22  ;;  %p2699_p3 = scmp.lt.u32.totalorder %s2695_s22, %s2872_s3 }
  0x27   :  { %p2701_p4 = pnand %p2699_p3, %p2696_p2 }
  0x29   :  { %2704 = shalt.err (!%p2701_p4)
}
  0x2a   :  { %s2705_s27 = scalar_lea.vmem %s43_s10, 4096  ;;  %p2710_p6 = scmp.lt.s32.totalorder %s43_s10, %s43_s10 }
  0x2b   :  { %p2706_p5 = scmp.ne.s32.totalorder %s43_s10, %s2705_s27  ;;  %p2711_p7 = scmp.lt.s32.totalorder %s2705_s27, %s2705_s27 }
  0x2d   :  { %p2712_p8 = por %p2711_p7, %p2710_p6 }
  0x2f   :  { %p2713_p9 = pnand %p2712_p8, %p2706_p5 }
  0x31   :  { %2716 = shalt.err (!%p2713_p9)
}
  0x32   :  { %s2750_s0 = smov 64   ;;  %s2751_s28 = smov 4  }
  0x33   :  { %48 = dma.hbm_to_vmem [thread:$0]  %s2872_s3, 4096, %s43_s10, [#allocation6], %s2750_s0, %s2750_s0, %s2751_s28  }
  0x34   :  { %2739 = dma.done.wait [#allocation3], 224  }
  0x35   :  { %2740 = vsyncadd [#allocation3], 4294967072 }
  0x36   :  { %2741 = dma.done.wait [#allocation6], 29184  }
  0x37   :  { %2742 = vsyncadd [#allocation6], 4294938112  ;;  %v2323_v0 = vld [vmem:[#allocation5 + $0x4] ss:$16 sps:$4 sm:$0xff]   ;;  %v2325_v1 = vld [vmem:[#allocation5 + $0xc] ss:$16 sps:$4 sm:$0xff]   ;;  %v69_v38 = vlaneseq }
  0x38   :  { %1314 = vmatprep.subr.bf16.mxu0 %v2323_v0  ;;  %v2327_v2 = vld [vmem:[#allocation5] ss:$16 sps:$4 sm:$0xff]   ;;  %v2328_v3 = vld [vmem:[#allocation5 + $0x8] ss:$16 sps:$4 sm:$0xff]   ;;  %1478 = vmatprep.subr.bf16.mxu1 %v2325_v1  ;;  %v2329_v4 = vld [vmem:[#allocation5 + $0x24] ss:$16 sps:$4 sm:$0xff]  }
  0x39   :  { %1315 = vmatpush1.bf16.msra.mxu0 %v2327_v2  ;;  %1479 = vmatpush1.bf16.msra.mxu1 %v2328_v3  ;;  %v2331_v5 = vld [vmem:[#allocation5 + $0x2c] ss:$16 sps:$4 sm:$0xff]   ;;  %v2333_v6 = vld [vmem:[#allocation5 + $0x20] ss:$16 sps:$4 sm:$0xff]   ;;  %v2334_v7 = vld [vmem:[#allocation5 + $0x28] ss:$16 sps:$4 sm:$0xff]  }
  0x3a   :  { %1316 = vmatprep.subr.bf16.mxu0 %v2329_v4  ;;  %1480 = vmatprep.subr.bf16.mxu1 %v2331_v5  ;;  %v2335_v8 = vld [vmem:[#allocation5 + $0x44] ss:$16 sps:$4 sm:$0xff]   ;;  %v2337_v9 = vld [vmem:[#allocation5 + $0x4c] ss:$16 sps:$4 sm:$0xff]   ;;  %v2339_v10 = vld [vmem:[#allocation5 + $0x40] ss:$16 sps:$4 sm:$0xff]  }
  0x3b   :  { %v2340_v11 = vld [vmem:[#allocation5 + $0x48] ss:$16 sps:$4 sm:$0xff]   ;;  %v2341_v12 = vld [vmem:[#allocation5 + $0x64] ss:$16 sps:$4 sm:$0xff]   ;;  %v2343_v13 = vld [vmem:[#allocation5 + $0x6c] ss:$16 sps:$4 sm:$0xff]  }
  0x3c   :  { %v2345_v14 = vld [vmem:[#allocation5 + $0x60] ss:$16 sps:$4 sm:$0xff]   ;;  %v2346_v15 = vld [vmem:[#allocation5 + $0x68] ss:$16 sps:$4 sm:$0xff]   ;;  %v2347_v16 = vld [vmem:[#allocation5 + $0x84] ss:$16 sps:$4 sm:$0xff]  }
  0x3d   :  { %1317 = vmatpush1.bf16.msra.mxu0 %v2333_v6  ;;  %1481 = vmatpush1.bf16.msra.mxu1 %v2334_v7  ;;  %v2349_v17 = vld [vmem:[#allocation5 + $0x8c] ss:$16 sps:$4 sm:$0xff]   ;;  %v2351_v18 = vld [vmem:[#allocation5 + $0x80] ss:$16 sps:$4 sm:$0xff]   ;;  %v2352_v19 = vld [vmem:[#allocation5 + $0x88] ss:$16 sps:$4 sm:$0xff]  }
  0x3e   :  { %1318 = vmatprep.subr.bf16.mxu0 %v2335_v8  ;;  %1482 = vmatprep.subr.bf16.mxu1 %v2337_v9  ;;  %v2353_v20 = vld [vmem:[#allocation5 + $0xa4] ss:$16 sps:$4 sm:$0xff]   ;;  %v2355_v21 = vld [vmem:[#allocation5 + $0xac] ss:$16 sps:$4 sm:$0xff]   ;;  %v2357_v22 = vld [vmem:[#allocation5 + $0xa0] ss:$16 sps:$4 sm:$0xff]  }
  0x3f   :  { %v2358_v23 = vld [vmem:[#allocation5 + $0xa8] ss:$16 sps:$4 sm:$0xff]   ;;  %v2359_v24 = vld [vmem:[#allocation5 + $0xc4] ss:$16 sps:$4 sm:$0xff]   ;;  %v2361_v25 = vld [vmem:[#allocation5 + $0xcc] ss:$16 sps:$4 sm:$0xff]  }
  0x40   :  { %v2363_v26 = vld [vmem:[#allocation5 + $0xc0] ss:$16 sps:$4 sm:$0xff]   ;;  %v2364_v27 = vld [vmem:[#allocation5 + $0xc8] ss:$16 sps:$4 sm:$0xff]   ;;  %v2365_v28 = vld [vmem:[#allocation5 + $0xe4] ss:$16 sps:$4 sm:$0xff]  }
  0x41   :  { %1319 = vmatpush1.bf16.msra.mxu0 %v2339_v10  ;;  %1483 = vmatpush1.bf16.msra.mxu1 %v2340_v11  ;;  %v2367_v29 = vld [vmem:[#allocation5 + $0xec] ss:$16 sps:$4 sm:$0xff]   ;;  %v2369_v30 = vld [vmem:[#allocation5 + $0xe0] ss:$16 sps:$4 sm:$0xff]   ;;  %v2370_v31 = vld [vmem:[#allocation5 + $0xe8] ss:$16 sps:$4 sm:$0xff]  }
  0x42   :  { %1320 = vmatprep.subr.bf16.mxu0 %v2341_v12  ;;  %1484 = vmatprep.subr.bf16.mxu1 %v2343_v13  ;;  %v2371_v32 = vld [vmem:[#allocation5 + $0x104] ss:$16 sps:$4 sm:$0xff]   ;;  %v2373_v33 = vld [vmem:[#allocation5 + $0x10c] ss:$16 sps:$4 sm:$0xff]   ;;  %v2375_v34 = vld [vmem:[#allocation5 + $0x100] ss:$16 sps:$4 sm:$0xff]  }
  0x43   :  { %v2376_v35 = vld [vmem:[#allocation5 + $0x108] ss:$16 sps:$4 sm:$0xff]   ;;  %v2752_v36 = vmov 1983009808   ;;  %v2377_v39 = vld [vmem:[#allocation5 + $0x124] ss:$16 sps:$4 sm:$0xff]  }
  0x44   :  { %v67_v37 = vunpack.c.l.s4 %v2752_v36  ;;  %v2379_v40 = vld [vmem:[#allocation5 + $0x12c] ss:$16 sps:$4 sm:$0xff]   ;;  %v2381_v41 = vld [vmem:[#allocation5 + $0x120] ss:$16 sps:$4 sm:$0xff]   ;;  %v2821_v43 = vshrl.u32 %v69_v38, 7  ;;  %vm1310_vm0 = vcmask 130048  }
  0x45   :  { %1321 = vmatpush1.bf16.msra.mxu0 %v2345_v14  ;;  %1485 = vmatpush1.bf16.msra.mxu1 %v2346_v15  ;;  %v2382_v44 = vld [vmem:[#allocation5 + $0x128] ss:$16 sps:$4 sm:$0xff]   ;;  %v2383_v45 = vld [vmem:[#allocation5 + $0x144] ss:$16 sps:$4 sm:$0xff]   ;;  %v2385_v46 = vld [vmem:[#allocation5 + $0x14c] ss:$16 sps:$4 sm:$0xff]  }
  0x46   :  { %1322 = vmatprep.subr.bf16.mxu0 %v2347_v16  ;;  %1486 = vmatprep.subr.bf16.mxu1 %v2349_v17  ;;  %v68_v42 = vunpack.c.0.s8 %v67_v37  ;;  %v2387_v47 = vld [vmem:[#allocation5 + $0x140] ss:$16 sps:$4 sm:$0xff]   ;;  %v2388_v48 = vld [vmem:[#allocation5 + $0x148] ss:$16 sps:$4 sm:$0xff]   ;;  %v2389_v50 = vld [vmem:[#allocation5 + $0x164] ss:$16 sps:$4 sm:$0xff]  }
  0x47   :  { %v2391_v51 = vld [vmem:[#allocation5 + $0x16c] ss:$16 sps:$4 sm:$0xff]   ;;  %v61_v52 = vld [vmem:[#allocation2] sm:$0xff]  ;;  %s2754_s8 = smov [#allocation8]  }
  0x48   :  { %v2824_v49 = vsub.s32 %v68_v42, %v2821_v43  ;;  %v2393_v53 = vld [vmem:[#allocation5 + $0x160] ss:$16 sps:$4 sm:$0xff]   ;;  %v2394_v55 = vld [vmem:[#allocation5 + $0x168] ss:$16 sps:$4 sm:$0xff]   ;;  %v2395_v56 = vld [vmem:[#allocation5 + $0x184] ss:$16 sps:$4 sm:$0xff]   ;;  %v65_v4 = vcombine.high %v61_v52, %v61_v52 }
  0x49   :  { %1323 = vmatpush1.bf16.msra.mxu0 %v2351_v18  ;;  %1487 = vmatpush1.bf16.msra.mxu1 %v2352_v19  ;;  %v2397_v57 = vld [vmem:[#allocation5 + $0x18c] ss:$16 sps:$4 sm:$0xff]   ;;  %v2399_v59 = vld [vmem:[#allocation5 + $0x180] ss:$16 sps:$4 sm:$0xff]   ;;  %v2400_v61 = vld [vmem:[#allocation5 + $0x188] ss:$16 sps:$4 sm:$0xff]  }
  0x4a   :  { %1324 = vmatprep.subr.bf16.mxu0 %v2353_v20  ;;  %1488 = vmatprep.subr.bf16.mxu1 %v2355_v21  ;;  %v72_v54 = vrot.slane %v61_v52, %v2824_v49  ;;  %v2401_v62 = vld [vmem:[#allocation5 + $0x1a4] ss:$16 sps:$4 sm:$0xff]   ;;  %v2403_v63 = vld [vmem:[#allocation5 + $0x1ac] ss:$16 sps:$4 sm:$0xff]   ;;  %v2405_v0 = vld [vmem:[#allocation5 + $0x1a0] ss:$16 sps:$4 sm:$0xff]   ;;  %v2828_v9 = vrot.slane %v65_v4, %v2824_v49 }
  0x4b   :  { %v2406_v1 = vld [vmem:[#allocation5 + $0x1a8] ss:$16 sps:$4 sm:$0xff]   ;;  %v2407_v2 = vld [vmem:[#allocation5 + $0x1c4] ss:$16 sps:$4 sm:$0xff]   ;;  %v2409_v3 = vld [vmem:[#allocation5 + $0x1cc] ss:$16 sps:$4 sm:$0xff]  }
  0x4c   :  { %v80_v58 = vcombine.high %v72_v54, %v72_v54  ;;  %v2411_v5 = vld [vmem:[#allocation5 + $0x1c0] ss:$16 sps:$4 sm:$0xff]   ;;  %v2412_v6 = vld [vmem:[#allocation5 + $0x1c8] ss:$16 sps:$4 sm:$0xff]   ;;  %v2413_v7 = vld [vmem:[#allocation5 + $0x1e4] ss:$16 sps:$4 sm:$0xff]   ;;  %v81_v14 = vcombine.high %v2828_v9, %v2828_v9  ;;  %v105_v16 = vpack.c.bf16 %v72_v54, %v72_v54 }
  0x4d   :  { %1325 = vmatpush1.bf16.msra.mxu0 %v2357_v22  ;;  %1489 = vmatpush1.bf16.msra.mxu1 %v2358_v23  ;;  %v2415_v8 = vld [vmem:[#allocation5 + $0x1ec] ss:$16 sps:$4 sm:$0xff]   ;;  %v2417_v10 = vld [vmem:[#allocation5 + $0x1e0] ss:$16 sps:$4 sm:$0xff]   ;;  %v2418_v11 = vld [vmem:[#allocation5 + $0x1e8] ss:$16 sps:$4 sm:$0xff]  }
  0x4e   :  { %1326 = vmatprep.subr.bf16.mxu0 %v2359_v24  ;;  %1490 = vmatprep.subr.bf16.mxu1 %v2361_v25  ;;  %v106_v60 = vpack.c.bf16 %v80_v58, %v80_v58  ;;  %v2422_v12 = vld [vmem:[#allocation5 + $0x204] ss:$16 sps:$4 sm:$0xff]   ;;  %v2425_v13 = vld [vmem:[#allocation5 + $0x20c] ss:$16 sps:$4 sm:$0xff]   ;;  %v2420_v15 = vld [vmem:[#allocation5 + $0x200] ss:$16 sps:$4 sm:$0xff]   ;;  %v108_v20 = vpack.c.bf16 %v81_v14, %v81_v14 }
  0x4f   :  { %v2423_v17 = vld [vmem:[#allocation5 + $0x208] ss:$16 sps:$4 sm:$0xff]   ;;  %v2428_v18 = vld [vmem:[#allocation5 + $0x224] ss:$16 sps:$4 sm:$0xff]   ;;  %v2431_v19 = vld [vmem:[#allocation5 + $0x22c] ss:$16 sps:$4 sm:$0xff]  }
  0x50   :  { %1346 = vmatprep.mubr.bf16.mxu0 %v106_v60  ;;  %1510 = vmatprep.mubr.bf16.mxu1 %v106_v60  ;;  %v2426_v21 = vld [vmem:[#allocation5 + $0x220] ss:$16 sps:$4 sm:$0xff]   ;;  %v2429_v22 = vld [vmem:[#allocation5 + $0x228] ss:$16 sps:$4 sm:$0xff]   ;;  %v2434_v23 = vld [vmem:[#allocation5 + $0x244] ss:$16 sps:$4 sm:$0xff]  }
  0x51   :  { %1327 = vmatpush1.bf16.msra.mxu0 %v2363_v26  ;;  %1491 = vmatpush1.bf16.msra.mxu1 %v2364_v27  ;;  %v2437_v24 = vld [vmem:[#allocation5 + $0x24c] ss:$16 sps:$4 sm:$0xff]   ;;  %v2432_v25 = vld [vmem:[#allocation5 + $0x240] ss:$16 sps:$4 sm:$0xff]   ;;  %v2435_v26 = vld [vmem:[#allocation5 + $0x248] ss:$16 sps:$4 sm:$0xff]  }
  0x52   :  { %1328 = vmatprep.subr.bf16.mxu0 %v2365_v28  ;;  %1492 = vmatprep.subr.bf16.mxu1 %v2367_v29  ;;  %v2440_v27 = vld [vmem:[#allocation5 + $0x264] ss:$16 sps:$4 sm:$0xff]   ;;  %v2443_v28 = vld [vmem:[#allocation5 + $0x26c] ss:$16 sps:$4 sm:$0xff]   ;;  %v2438_v29 = vld [vmem:[#allocation5 + $0x260] ss:$16 sps:$4 sm:$0xff]  }
  0x53   :  { %v2455_v36 = vld [vmem:[#allocation5 + $0x2ac] ss:$16 sps:$4 sm:$0xff]   ;;  %v2450_v37 = vld [vmem:[#allocation5 + $0x2a0] ss:$16 sps:$4 sm:$0xff]   ;;  %v2453_v38 = vld [vmem:[#allocation5 + $0x2a8] ss:$16 sps:$4 sm:$0xff]  }
  0x54   :  { %v2459_v42 = vld [vmem:[#allocation5 + $0x2c8] ss:$16 sps:$4 sm:$0xff]   ;;  %v2479_v54 = vld [vmem:[#allocation5 + $0x32c] ss:$16 sps:$4 sm:$0xff]   ;;  %v2512_v14 = vld [vmem:[#allocation5 + $0x3e4] ss:$16 sps:$4 sm:$0xff]  }
  0x55   :  { %1329 = vmatpush1.bf16.msra.mxu0 %v2369_v30  ;;  %1493 = vmatpush1.bf16.msra.mxu1 %v2370_v31  ;;  %v2441_v30 = vld [vmem:[#allocation5 + $0x268] ss:$16 sps:$4 sm:$0xff]   ;;  %v2446_v31 = vld [vmem:[#allocation5 + $0x284] ss:$16 sps:$4 sm:$0xff]   ;;  %v2485_v58 = vld [vmem:[#allocation5 + $0x34c] ss:$16 sps:$4 sm:$0xff]  }
  0x56   :  { %1330 = vmatprep.subr.bf16.mxu0 %v2371_v32  ;;  %1494 = vmatprep.subr.bf16.mxu1 %v2373_v33  ;;  %v2449_v32 = vld [vmem:[#allocation5 + $0x28c] ss:$16 sps:$4 sm:$0xff]   ;;  %v2444_v33 = vld [vmem:[#allocation5 + $0x280] ss:$16 sps:$4 sm:$0xff]   ;;  %v2471_v52 = vld [vmem:[#allocation5 + $0x308] ss:$16 sps:$4 sm:$0xff]  }
  0x57   :  { %v2483_v60 = vld [vmem:[#allocation5 + $0x348] ss:$16 sps:$4 sm:$0xff]   ;;  %s2000_s9 = sshll.u32 %s2754_s8, 4  ;;  %s2001_s9 = int_to_ptr.vmem [resolvable:$true] %s2000_s9 }
  0x58   :  { %v2495_v4 = vld [vmem:[#allocation5 + $0x388] ss:$16 sps:$4 sm:$0xff]   ;;  %s2717_s10 = scalar_lea.vmem %s2001_s9, 32  ;;  %p2722_p11 = scmp.lt.s32.totalorder %s2001_s9, %s2001_s9 }
  0x59   :  { %1331 = vmatpush1.bf16.msra.mxu0 %v2375_v34  ;;  %1495 = vmatpush1.bf16.msra.mxu1 %v2376_v35  ;;  %v2447_v34 = vld [vmem:[#allocation5 + $0x288] ss:$16 sps:$4 sm:$0xff]   ;;  %v2452_v35 = vld [vmem:[#allocation5 + $0x2a4] ss:$16 sps:$4 sm:$0xff]   ;;  %p2718_p10 = scmp.ne.s32.totalorder %s2001_s9, %s2717_s10  ;;  %p2723_p12 = scmp.lt.s32.totalorder %s2717_s10, %s2717_s10 }
  0x5a   :  { %1332 = vmatprep.subr.bf16.mxu0 %v2377_v39  ;;  %1496 = vmatprep.subr.bf16.mxu1 %v2379_v40  ;;  %v2458_v39 = vld [vmem:[#allocation5 + $0x2c4] ss:$16 sps:$4 sm:$0xff]   ;;  %v2461_v40 = vld [vmem:[#allocation5 + $0x2cc] ss:$16 sps:$4 sm:$0xff]  }
  0x5b   :  { %p2724_p13 = por %p2723_p12, %p2722_p11 }
  0x5d   :  { %1333 = vmatpush1.bf16.msra.mxu0 %v2381_v41  ;;  %1497 = vmatpush1.bf16.msra.mxu1 %v2382_v44  ;;  %v2456_v41 = vld [vmem:[#allocation5 + $0x2c0] ss:$16 sps:$4 sm:$0xff]   ;;  %v2464_v44 = vld [vmem:[#allocation5 + $0x2e4] ss:$16 sps:$4 sm:$0xff]   ;;  %p2725_p0 = pnand %p2724_p13, %p2718_p10 }
  0x5e   :  { %1334 = vmatprep.subr.bf16.mxu0 %v2383_v45  ;;  %1498 = vmatprep.subr.bf16.mxu1 %v2385_v46  ;;  %v2467_v45 = vld [vmem:[#allocation5 + $0x2ec] ss:$16 sps:$4 sm:$0xff]   ;;  %v2462_v46 = vld [vmem:[#allocation5 + $0x2e0] ss:$16 sps:$4 sm:$0xff]  }
  0x61   :  { %1335 = vmatpush1.bf16.msra.mxu0 %v2387_v47  ;;  %1499 = vmatpush1.bf16.msra.mxu1 %v2388_v48  ;;  %v2465_v47 = vld [vmem:[#allocation5 + $0x2e8] ss:$16 sps:$4 sm:$0xff]   ;;  %v2470_v48 = vld [vmem:[#allocation5 + $0x304] ss:$16 sps:$4 sm:$0xff]  }
  0x62   :  { %1336 = vmatprep.subr.bf16.mxu0 %v2389_v50  ;;  %1500 = vmatprep.subr.bf16.mxu1 %v2391_v51  ;;  %v2473_v50 = vld [vmem:[#allocation5 + $0x30c] ss:$16 sps:$4 sm:$0xff]   ;;  %v2468_v51 = vld [vmem:[#allocation5 + $0x300] ss:$16 sps:$4 sm:$0xff]  }
  0x65   :  { %1337 = vmatpush1.bf16.msra.mxu0 %v2393_v53  ;;  %1501 = vmatpush1.bf16.msra.mxu1 %v2394_v55  ;;  %v2476_v53 = vld [vmem:[#allocation5 + $0x324] ss:$16 sps:$4 sm:$0xff]   ;;  %v2474_v55 = vld [vmem:[#allocation5 + $0x320] ss:$16 sps:$4 sm:$0xff]  }
  0x66   :  { %1338 = vmatprep.subr.bf16.mxu0 %v2395_v56  ;;  %1502 = vmatprep.subr.bf16.mxu1 %v2397_v57  ;;  %v2477_v56 = vld [vmem:[#allocation5 + $0x328] ss:$16 sps:$4 sm:$0xff]   ;;  %v2482_v57 = vld [vmem:[#allocation5 + $0x344] ss:$16 sps:$4 sm:$0xff]  }
  0x69   :  { %1339 = vmatpush1.bf16.msra.mxu0 %v2399_v59  ;;  %1503 = vmatpush1.bf16.msra.mxu1 %v2400_v61  ;;  %v2480_v59 = vld [vmem:[#allocation5 + $0x340] ss:$16 sps:$4 sm:$0xff]   ;;  %v2488_v61 = vld [vmem:[#allocation5 + $0x364] ss:$16 sps:$4 sm:$0xff]  }
  0x6a   :  { %1340 = vmatprep.subr.bf16.mxu0 %v2401_v62  ;;  %1504 = vmatprep.subr.bf16.mxu1 %v2403_v63  ;;  %v2491_v62 = vld [vmem:[#allocation5 + $0x36c] ss:$16 sps:$4 sm:$0xff]   ;;  %v2486_v63 = vld [vmem:[#allocation5 + $0x360] ss:$16 sps:$4 sm:$0xff]  }
  0x6d   :  { %1341 = vmatpush1.bf16.msra.mxu0 %v2405_v0  ;;  %1505 = vmatpush1.bf16.msra.mxu1 %v2406_v1  ;;  %v2489_v0 = vld [vmem:[#allocation5 + $0x368] ss:$16 sps:$4 sm:$0xff]   ;;  %v2494_v1 = vld [vmem:[#allocation5 + $0x384] ss:$16 sps:$4 sm:$0xff]  }
  0x6e   :  { %1342 = vmatprep.subr.bf16.mxu0 %v2407_v2  ;;  %1506 = vmatprep.subr.bf16.mxu1 %v2409_v3  ;;  %v2497_v2 = vld [vmem:[#allocation5 + $0x38c] ss:$16 sps:$4 sm:$0xff]   ;;  %v2492_v3 = vld [vmem:[#allocation5 + $0x380] ss:$16 sps:$4 sm:$0xff]  }
  0x71   :  { %1343 = vmatpush1.bf16.msra.mxu0 %v2411_v5  ;;  %1507 = vmatpush1.bf16.msra.mxu1 %v2412_v6  ;;  %v2500_v5 = vld [vmem:[#allocation5 + $0x3a4] ss:$16 sps:$4 sm:$0xff]   ;;  %v2503_v6 = vld [vmem:[#allocation5 + $0x3ac] ss:$16 sps:$4 sm:$0xff]  }
  0x72   :  { %1344 = vmatprep.subr.bf16.mxu0 %v2413_v7  ;;  %1508 = vmatprep.subr.bf16.mxu1 %v2415_v8  ;;  %v2498_v7 = vld [vmem:[#allocation5 + $0x3a0] ss:$16 sps:$4 sm:$0xff]   ;;  %v2501_v8 = vld [vmem:[#allocation5 + $0x3a8] ss:$16 sps:$4 sm:$0xff]  }
  0x75   :  { %1345 = vmatpush1.bf16.msra.mxu0 %v2417_v10  ;;  %1509 = vmatpush1.bf16.msra.mxu1 %v2418_v11  ;;  %v2506_v10 = vld [vmem:[#allocation5 + $0x3c4] ss:$16 sps:$4 sm:$0xff]   ;;  %v2509_v11 = vld [vmem:[#allocation5 + $0x3cc] ss:$16 sps:$4 sm:$0xff]  }
  0x76   :  { %1355 = vmatprep.subr.bf16.mxu0 %v2422_v12  ;;  %1519 = vmatprep.subr.bf16.mxu1 %v2425_v13  ;;  %v2504_v12 = vld [vmem:[#allocation5 + $0x3c0] ss:$16 sps:$4 sm:$0xff]   ;;  %v2507_v13 = vld [vmem:[#allocation5 + $0x3c8] ss:$16 sps:$4 sm:$0xff]  }
  0x78   :  { %1347 = vmatmul.mubr.bf16.vlgmr.msra.gmra.mrb[0].mxu0 %v105_v16  ;;  %1511 = vmatmul.mubr.bf16.vlgmr.msra.gmra.mrb[0].mxu1 %v105_v16  ;;  %v2510_v16 = vld [vmem:[#allocation5 + $0x3e0] ss:$16 sps:$4 sm:$0xff]  }
  0x79   :  { %1356 = vmatpush1.bf16.msra.mxu0 %v2420_v15  ;;  %1520 = vmatpush1.bf16.msra.mxu1 %v2423_v17  ;;  %v2515_v15 = vld [vmem:[#allocation5 + $0x3ec] ss:$16 sps:$4 sm:$0xff]   ;;  %v2513_v17 = vld [vmem:[#allocation5 + $0x3e8] ss:$16 sps:$4 sm:$0xff]  }
  0x7a   :  { %1357 = vmatprep.subr.bf16.mxu0 %v2428_v18  ;;  %1521 = vmatprep.subr.bf16.mxu1 %v2431_v19  ;;  %v2518_v18 = vld [vmem:[#allocation5 + $0x404] ss:$16 sps:$4 sm:$0xff]   ;;  %v2521_v19 = vld [vmem:[#allocation5 + $0x40c] ss:$16 sps:$4 sm:$0xff]  }
  0x7b   :  { %1387 = vmatprep.mubr.bf16.mxu0 %v108_v20  ;;  %1551 = vmatprep.mubr.bf16.mxu1 %v108_v20  ;;  %v2516_v20 = vld [vmem:[#allocation5 + $0x400] ss:$16 sps:$4 sm:$0xff]  }
  0x7d   :  { %1358 = vmatpush1.bf16.msra.mxu0 %v2426_v21  ;;  %1522 = vmatpush1.bf16.msra.mxu1 %v2429_v22  ;;  %v107_v21 = vpack.c.bf16 %v2828_v9, %v2828_v9  ;;  %v2519_v22 = vld [vmem:[#allocation5 + $0x408] ss:$16 sps:$4 sm:$0xff]  }
  0x7e   :  { %1359 = vmatprep.subr.bf16.mxu0 %v2434_v23  ;;  %1523 = vmatprep.subr.bf16.mxu1 %v2437_v24  ;;  %v2834_v23 = vld [vmem:[#allocation2 + $0x8] sm:$0x3f]  ;;  %v2524_v24 = vld [vmem:[#allocation5 + $0x424] ss:$16 sps:$4 sm:$0xff]  }
  0x81   :  { %1360 = vmatpush1.bf16.msra.mxu0 %v2432_v25  ;;  %1524 = vmatpush1.bf16.msra.mxu1 %v2435_v26  ;;  %v2527_v25 = vld [vmem:[#allocation5 + $0x42c] ss:$16 sps:$4 sm:$0xff]   ;;  %v2838_v26 = vrot.slane %v2834_v23, %v2824_v49 }
  0x82   :  { %1361 = vmatprep.subr.bf16.mxu0 %v2440_v27  ;;  %1525 = vmatprep.subr.bf16.mxu1 %v2443_v28  ;;  %v2522_v27 = vld [vmem:[#allocation5 + $0x420] ss:$16 sps:$4 sm:$0xff]   ;;  %v2525_v28 = vld [vmem:[#allocation5 + $0x428] ss:$16 sps:$4 sm:$0xff]  }
  0x83   :  { %v97_v9 = vcombine.high %v2838_v26, %v2838_v26 }
  0x85   :  { %1362 = vmatpush1.bf16.msra.mxu0 %v2438_v29  ;;  %1526 = vmatpush1.bf16.msra.mxu1 %v2441_v30  ;;  %v2530_v29 = vld [vmem:[#allocation5 + $0x444] ss:$16 sps:$4 sm:$0xff]   ;;  %v2533_v30 = vld [vmem:[#allocation5 + $0x44c] ss:$16 sps:$4 sm:$0xff]  }
  0x86   :  { %1363 = vmatprep.subr.bf16.mxu0 %v2446_v31  ;;  %1527 = vmatprep.subr.bf16.mxu1 %v2449_v32  ;;  %v110_v31 = vpack.c.bf16 %v97_v9, %v97_v9  ;;  %v2528_v32 = vld [vmem:[#allocation5 + $0x440] ss:$16 sps:$4 sm:$0xff]   ;;  %v109_v9 = vpack.c.bf16 %v2838_v26, %v2838_v26 }
  0x89   :  { %1364 = vmatpush1.bf16.msra.mxu0 %v2444_v33  ;;  %1528 = vmatpush1.bf16.msra.mxu1 %v2447_v34  ;;  %v2531_v33 = vld [vmem:[#allocation5 + $0x448] ss:$16 sps:$4 sm:$0xff]   ;;  %v2536_v34 = vld [vmem:[#allocation5 + $0x464] ss:$16 sps:$4 sm:$0xff]  }
  0x8a   :  { %1365 = vmatprep.subr.bf16.mxu0 %v2452_v35  ;;  %1529 = vmatprep.subr.bf16.mxu1 %v2455_v36  ;;  %v2539_v35 = vld [vmem:[#allocation5 + $0x46c] ss:$16 sps:$4 sm:$0xff]   ;;  %v2534_v36 = vld [vmem:[#allocation5 + $0x460] ss:$16 sps:$4 sm:$0xff]  }
  0x8d   :  { %1366 = vmatpush1.bf16.msra.mxu0 %v2450_v37  ;;  %1530 = vmatpush1.bf16.msra.mxu1 %v2453_v38  ;;  %v2537_v37 = vld [vmem:[#allocation5 + $0x468] ss:$16 sps:$4 sm:$0xff]   ;;  %v2542_v38 = vld [vmem:[#allocation5 + $0x484] ss:$16 sps:$4 sm:$0xff]  }
  0x8e   :  { %1367 = vmatprep.subr.bf16.mxu0 %v2458_v39  ;;  %1531 = vmatprep.subr.bf16.mxu1 %v2461_v40  ;;  %v2545_v39 = vld [vmem:[#allocation5 + $0x48c] ss:$16 sps:$4 sm:$0xff]   ;;  %v2540_v40 = vld [vmem:[#allocation5 + $0x480] ss:$16 sps:$4 sm:$0xff]  }
  0x91   :  { %1368 = vmatpush1.bf16.msra.mxu0 %v2456_v41  ;;  %1532 = vmatpush1.bf16.msra.mxu1 %v2459_v42  ;;  %v2543_v41 = vld [vmem:[#allocation5 + $0x488] ss:$16 sps:$4 sm:$0xff]   ;;  %v2548_v42 = vld [vmem:[#allocation5 + $0x4a4] ss:$16 sps:$4 sm:$0xff]  }
  0x92   :  { %1369 = vmatprep.subr.bf16.mxu0 %v2464_v44  ;;  %1533 = vmatprep.subr.bf16.mxu1 %v2467_v45  ;;  %v2551_v44 = vld [vmem:[#allocation5 + $0x4ac] ss:$16 sps:$4 sm:$0xff]   ;;  %v2546_v45 = vld [vmem:[#allocation5 + $0x4a0] ss:$16 sps:$4 sm:$0xff]  }
  0x95   :  { %1370 = vmatpush1.bf16.msra.mxu0 %v2462_v46  ;;  %1534 = vmatpush1.bf16.msra.mxu1 %v2465_v47  ;;  %v2549_v46 = vld [vmem:[#allocation5 + $0x4a8] ss:$16 sps:$4 sm:$0xff]   ;;  %v2554_v47 = vld [vmem:[#allocation5 + $0x4c4] ss:$16 sps:$4 sm:$0xff]  }
  0x96   :  { %1371 = vmatprep.subr.bf16.mxu0 %v2470_v48  ;;  %1535 = vmatprep.subr.bf16.mxu1 %v2473_v50  ;;  %v2557_v48 = vld [vmem:[#allocation5 + $0x4cc] ss:$16 sps:$4 sm:$0xff]   ;;  %v2552_v50 = vld [vmem:[#allocation5 + $0x4c0] ss:$16 sps:$4 sm:$0xff]  }
  0x99   :  { %1372 = vmatpush1.bf16.msra.mxu0 %v2468_v51  ;;  %1536 = vmatpush1.bf16.msra.mxu1 %v2471_v52  ;;  %v2555_v51 = vld [vmem:[#allocation5 + $0x4c8] ss:$16 sps:$4 sm:$0xff]   ;;  %v2560_v52 = vld [vmem:[#allocation5 + $0x4e4] ss:$16 sps:$4 sm:$0xff]  }
  0x9a   :  { %1373 = vmatprep.subr.bf16.mxu0 %v2476_v53  ;;  %1537 = vmatprep.subr.bf16.mxu1 %v2479_v54  ;;  %v2563_v53 = vld [vmem:[#allocation5 + $0x4ec] ss:$16 sps:$4 sm:$0xff]   ;;  %v2558_v54 = vld [vmem:[#allocation5 + $0x4e0] ss:$16 sps:$4 sm:$0xff]  }
  0x9d   :  { %1374 = vmatpush1.bf16.msra.mxu0 %v2474_v55  ;;  %1538 = vmatpush1.bf16.msra.mxu1 %v2477_v56  ;;  %v2561_v55 = vld [vmem:[#allocation5 + $0x4e8] ss:$16 sps:$4 sm:$0xff]   ;;  %v2566_v56 = vld [vmem:[#allocation5 + $0x504] ss:$16 sps:$4 sm:$0xff]  }
  0x9e   :  { %1375 = vmatprep.subr.bf16.mxu0 %v2482_v57  ;;  %1539 = vmatprep.subr.bf16.mxu1 %v2485_v58  ;;  %v2569_v57 = vld [vmem:[#allocation5 + $0x50c] ss:$16 sps:$4 sm:$0xff]   ;;  %v2564_v58 = vld [vmem:[#allocation5 + $0x500] ss:$16 sps:$4 sm:$0xff]  }
  0xa1   :  { %1376 = vmatpush1.bf16.msra.mxu0 %v2480_v59  ;;  %1540 = vmatpush1.bf16.msra.mxu1 %v2483_v60  ;;  %v2567_v59 = vld [vmem:[#allocation5 + $0x508] ss:$16 sps:$4 sm:$0xff]   ;;  %v2572_v60 = vld [vmem:[#allocation5 + $0x524] ss:$16 sps:$4 sm:$0xff]  }
  0xa2   :  { %1377 = vmatprep.subr.bf16.mxu0 %v2488_v61  ;;  %1541 = vmatprep.subr.bf16.mxu1 %v2491_v62  ;;  %v2575_v61 = vld [vmem:[#allocation5 + $0x52c] ss:$16 sps:$4 sm:$0xff]   ;;  %v2570_v62 = vld [vmem:[#allocation5 + $0x520] ss:$16 sps:$4 sm:$0xff]  }
  0xa5   :  { %1378 = vmatpush1.bf16.msra.mxu0 %v2486_v63  ;;  %1542 = vmatpush1.bf16.msra.mxu1 %v2489_v0  ;;  %v2573_v63 = vld [vmem:[#allocation5 + $0x528] ss:$16 sps:$4 sm:$0xff]   ;;  %v2578_v0 = vld [vmem:[#allocation5 + $0x544] ss:$16 sps:$4 sm:$0xff]  }
  0xa6   :  { %1379 = vmatprep.subr.bf16.mxu0 %v2494_v1  ;;  %1543 = vmatprep.subr.bf16.mxu1 %v2497_v2  ;;  %v2581_v1 = vld [vmem:[#allocation5 + $0x54c] ss:$16 sps:$4 sm:$0xff]   ;;  %v2576_v2 = vld [vmem:[#allocation5 + $0x540] ss:$16 sps:$4 sm:$0xff]  }
  0xa9   :  { %1380 = vmatpush1.bf16.msra.mxu0 %v2492_v3  ;;  %1544 = vmatpush1.bf16.msra.mxu1 %v2495_v4  ;;  %v2579_v3 = vld [vmem:[#allocation5 + $0x548] ss:$16 sps:$4 sm:$0xff]   ;;  %v2584_v4 = vld [vmem:[#allocation5 + $0x564] ss:$16 sps:$4 sm:$0xff]  }
  0xaa   :  { %1381 = vmatprep.subr.bf16.mxu0 %v2500_v5  ;;  %1545 = vmatprep.subr.bf16.mxu1 %v2503_v6  ;;  %v2587_v5 = vld [vmem:[#allocation5 + $0x56c] ss:$16 sps:$4 sm:$0xff]   ;;  %v2582_v6 = vld [vmem:[#allocation5 + $0x560] ss:$16 sps:$4 sm:$0xff]  }
  0xad   :  { %1382 = vmatpush1.bf16.msra.mxu0 %v2498_v7  ;;  %1546 = vmatpush1.bf16.msra.mxu1 %v2501_v8  ;;  %v2585_v7 = vld [vmem:[#allocation5 + $0x568] ss:$16 sps:$4 sm:$0xff]   ;;  %v2590_v8 = vld [vmem:[#allocation5 + $0x584] ss:$16 sps:$4 sm:$0xff]  }
  0xae   :  { %1383 = vmatprep.subr.bf16.mxu0 %v2506_v10  ;;  %1547 = vmatprep.subr.bf16.mxu1 %v2509_v11  ;;  %v2593_v10 = vld [vmem:[#allocation5 + $0x58c] ss:$16 sps:$4 sm:$0xff]   ;;  %v2588_v11 = vld [vmem:[#allocation5 + $0x580] ss:$16 sps:$4 sm:$0xff]  }
  0xb1   :  { %1384 = vmatpush1.bf16.msra.mxu0 %v2504_v12  ;;  %1548 = vmatpush1.bf16.msra.mxu1 %v2507_v13  ;;  %v2591_v12 = vld [vmem:[#allocation5 + $0x588] ss:$16 sps:$4 sm:$0xff]   ;;  %v2596_v13 = vld [vmem:[#allocation5 + $0x5a4] ss:$16 sps:$4 sm:$0xff]  }
  0xb2   :  { %1385 = vmatprep.subr.bf16.mxu0 %v2512_v14  ;;  %1549 = vmatprep.subr.bf16.mxu1 %v2515_v15  ;;  %v2599_v14 = vld [vmem:[#allocation5 + $0x5ac] ss:$16 sps:$4 sm:$0xff]   ;;  %v2594_v15 = vld [vmem:[#allocation5 + $0x5a0] ss:$16 sps:$4 sm:$0xff]  }
  0xb5   :  { %1386 = vmatpush1.bf16.msra.mxu0 %v2510_v16  ;;  %1550 = vmatpush1.bf16.msra.mxu1 %v2513_v17  ;;  %v2597_v16 = vld [vmem:[#allocation5 + $0x5a8] ss:$16 sps:$4 sm:$0xff]   ;;  %v2602_v17 = vld [vmem:[#allocation5 + $0x5c4] ss:$16 sps:$4 sm:$0xff]  }
  0xb6   :  { %1396 = vmatprep.subr.bf16.mxu0 %v2518_v18  ;;  %1560 = vmatprep.subr.bf16.mxu1 %v2521_v19  ;;  %v2605_v18 = vld [vmem:[#allocation5 + $0x5cc] ss:$16 sps:$4 sm:$0xff]   ;;  %v2600_v19 = vld [vmem:[#allocation5 + $0x5c0] ss:$16 sps:$4 sm:$0xff]  }
  0xb8   :  { %1388 = vmatmul.mubr.bf16.vlgmr.msra.gmra.mrb[0].mxu0 %v107_v21  ;;  %1552 = vmatmul.mubr.bf16.vlgmr.msra.gmra.mrb[0].mxu1 %v107_v21  ;;  %v2608_v21 = vld [vmem:[#allocation5 + $0x5e4] ss:$16 sps:$4 sm:$0xff]  }
  0xb9   :  { %1397 = vmatpush1.bf16.msra.mxu0 %v2516_v20  ;;  %1561 = vmatpush1.bf16.msra.mxu1 %v2519_v22  ;;  %v2603_v20 = vld [vmem:[#allocation5 + $0x5c8] ss:$16 sps:$4 sm:$0xff]   ;;  %v2611_v22 = vld [vmem:[#allocation5 + $0x5ec] ss:$16 sps:$4 sm:$0xff]  }
  0xba   :  { %1398 = vmatprep.subr.bf16.mxu0 %v2524_v24  ;;  %1562 = vmatprep.subr.bf16.mxu1 %v2527_v25  ;;  %v2606_v24 = vld [vmem:[#allocation5 + $0x5e0] ss:$16 sps:$4 sm:$0xff]   ;;  %v2609_v25 = vld [vmem:[#allocation5 + $0x5e8] ss:$16 sps:$4 sm:$0xff]  }
  0xbb   :  { %1428 = vmatprep.mubr.bf16.mxu0 %v110_v31  ;;  %1592 = vmatprep.mubr.bf16.mxu1 %v110_v31  ;;  %v2619_v31 = vld [vmem:[#allocation7 + $0x40] sm:$0xff]  }
  0xbd   :  { %1399 = vmatpush1.bf16.msra.mxu0 %v2522_v27  ;;  %1563 = vmatpush1.bf16.msra.mxu1 %v2525_v28  ;;  %v2615_v27 = vld [vmem:[#allocation5 + $0x604] ss:$16 sps:$4 sm:$0xff]   ;;  %v2618_v28 = vld [vmem:[#allocation5 + $0x60c] ss:$16 sps:$4 sm:$0xff]  }
  0xbe   :  { %1400 = vmatprep.subr.bf16.mxu0 %v2530_v29  ;;  %1564 = vmatprep.subr.bf16.mxu1 %v2533_v30  ;;  %v2613_v29 = vld [vmem:[#allocation5 + $0x600] ss:$16 sps:$4 sm:$0xff]   ;;  %v2616_v30 = vld [vmem:[#allocation5 + $0x608] ss:$16 sps:$4 sm:$0xff]  }
  0xc1   :  { %1401 = vmatpush1.bf16.msra.mxu0 %v2528_v32  ;;  %1565 = vmatpush1.bf16.msra.mxu1 %v2531_v33  ;;  %v2620_v32 = vld [vmem:[#allocation7 + $0xc0] sm:$0xff]   ;;  %v82_v33 = vcombine.high %v2834_v23, %v2834_v23  ;;  %v2625_v23 = vld [vmem:[#allocation7 + $0x8] sm:$0xff]  }
  0xc2   :  { %1402 = vmatprep.subr.bf16.mxu0 %v2536_v34  ;;  %1566 = vmatprep.subr.bf16.mxu1 %v2539_v35  ;;  %v2753_v34 = vmov 0  }
  0xc3   :  { %v96_v26 = vrot.slane %v82_v33, %v2824_v49  ;;  %v2630_v49 = vld [vmem:[#allocation7 + $0x90] sm:$0xff]  }
  0xc5   :  { %1403 = vmatpush1.bf16.msra.mxu0 %v2534_v36  ;;  %1567 = vmatpush1.bf16.msra.mxu1 %v2537_v37  ;;  %v111_v35 = vpack.c.bf16 %v96_v26, %v96_v26  ;;  %v2621_v36 = vld [vmem:[#allocation7] sm:$0xff]  }
  0xc6   :  { %1404 = vmatprep.subr.bf16.mxu0 %v2542_v38  ;;  %1568 = vmatprep.subr.bf16.mxu1 %v2545_v39  ;;  %v2622_v37 = vld [vmem:[#allocation7 + $0x80] sm:$0xff]   ;;  %v2623_v38 = vld [vmem:[#allocation7 + $0x48] sm:$0xff]  }
  0xc7   :  { %v2624_v39 = vld [vmem:[#allocation7 + $0xc8] sm:$0xff]  }
  0xc9   :  { %1405 = vmatpush1.bf16.msra.mxu0 %v2540_v40  ;;  %1569 = vmatpush1.bf16.msra.mxu1 %v2543_v41  ;;  %v2626_v40 = vld [vmem:[#allocation7 + $0x88] sm:$0xff]   ;;  %v2627_v41 = vld [vmem:[#allocation7 + $0x50] sm:$0xff]  }
  0xca   :  { %1406 = vmatprep.subr.bf16.mxu0 %v2548_v42  ;;  %1570 = vmatprep.subr.bf16.mxu1 %v2551_v44  ;;  %v2628_v42 = vld [vmem:[#allocation7 + $0xd0] sm:$0xff]  }
  0xcb   :  { %v2629_v44 = vld [vmem:[#allocation7 + $0x10] sm:$0xff]  }
  0xcd   :  { %1407 = vmatpush1.bf16.msra.mxu0 %v2546_v45  ;;  %1571 = vmatpush1.bf16.msra.mxu1 %v2549_v46  ;;  %v2631_v45 = vld [vmem:[#allocation7 + $0x58] sm:$0xff]  }
  0xce   :  { %1408 = vmatprep.subr.bf16.mxu0 %v2554_v47  ;;  %1572 = vmatprep.subr.bf16.mxu1 %v2557_v48  ;;  %v2632_v46 = vld [vmem:[#allocation7 + $0xd8] sm:$0xff]  }
  0xcf   :  { %v2633_v47 = vld [vmem:[#allocation7 + $0x18] sm:$0xff]  }
  0xd0   :  { %v2634_v48 = vld [vmem:[#allocation7 + $0x98] sm:$0xff]  }
  0xd1   :  { %1409 = vmatpush1.bf16.msra.mxu0 %v2552_v50  ;;  %1573 = vmatpush1.bf16.msra.mxu1 %v2555_v51  ;;  %v2635_v50 = vld [vmem:[#allocation7 + $0x60] sm:$0xff]  }
  0xd2   :  { %1410 = vmatprep.subr.bf16.mxu0 %v2560_v52  ;;  %1574 = vmatprep.subr.bf16.mxu1 %v2563_v53  ;;  %v2636_v51 = vld [vmem:[#allocation7 + $0xe0] sm:$0xff]  }
  0xd3   :  { %v2637_v52 = vld [vmem:[#allocation7 + $0x20] sm:$0xff]  }
  0xd4   :  { %v2638_v53 = vld [vmem:[#allocation7 + $0xa0] sm:$0xff]  }
  0xd5   :  { %1411 = vmatpush1.bf16.msra.mxu0 %v2558_v54  ;;  %1575 = vmatpush1.bf16.msra.mxu1 %v2561_v55  ;;  %v2639_v54 = vld [vmem:[#allocation7 + $0x68] sm:$0xff]  }
  0xd6   :  { %1412 = vmatprep.subr.bf16.mxu0 %v2566_v56  ;;  %1576 = vmatprep.subr.bf16.mxu1 %v2569_v57  ;;  %v2640_v55 = vld [vmem:[#allocation7 + $0xe8] sm:$0xff]  }
  0xd7   :  { %v2641_v56 = vld [vmem:[#allocation7 + $0x28] sm:$0xff]  }
  0xd8   :  { %v2642_v57 = vld [vmem:[#allocation7 + $0xa8] sm:$0xff]  }
  0xd9   :  { %1413 = vmatpush1.bf16.msra.mxu0 %v2564_v58  ;;  %1577 = vmatpush1.bf16.msra.mxu1 %v2567_v59  ;;  %v2643_v58 = vld [vmem:[#allocation7 + $0x70] sm:$0xff]  }
  0xda   :  { %1414 = vmatprep.subr.bf16.mxu0 %v2572_v60  ;;  %1578 = vmatprep.subr.bf16.mxu1 %v2575_v61  ;;  %v2644_v59 = vld [vmem:[#allocation7 + $0xf0] sm:$0xff]  }
  0xdb   :  { %v2645_v60 = vld [vmem:[#allocation7 + $0x30] sm:$0xff]  }
  0xdc   :  { %v2646_v61 = vld [vmem:[#allocation7 + $0xb0] sm:$0xff]  }
  0xdd   :  { %1415 = vmatpush1.bf16.msra.mxu0 %v2570_v62  ;;  %1579 = vmatpush1.bf16.msra.mxu1 %v2573_v63  ;;  %v2647_v62 = vld [vmem:[#allocation7 + $0x78] sm:$0xff]  }
  0xde   :  { %1416 = vmatprep.subr.bf16.mxu0 %v2578_v0  ;;  %1580 = vmatprep.subr.bf16.mxu1 %v2581_v1  ;;  %v2648_v63 = vld [vmem:[#allocation7 + $0xf8] sm:$0xff]  }
  0xdf   :  { %v2649_v0 = vld [vmem:[#allocation7 + $0x38] sm:$0xff]  }
  0xe0   :  { %v2650_v1 = vld [vmem:[#allocation7 + $0xb8] sm:$0xff]  }
  0xe1   :  { %1417 = vmatpush1.bf16.msra.mxu0 %v2576_v2  ;;  %1581 = vmatpush1.bf16.msra.mxu1 %v2579_v3  ;;  %v312_v2 = vsub.s32 0, %v2821_v43  ;;  %v320_v3 = vsub.s32 2, %v2821_v43 }
  0xe2   :  { %1418 = vmatprep.subr.bf16.mxu0 %v2584_v4  ;;  %1582 = vmatprep.subr.bf16.mxu1 %v2587_v5  ;;  %v308_v4 = vld [vmem:[%s2871_s2] sm:$0xf]  ;;  %v316_v5 = vsub.s32 1, %v2821_v43 }
  0xe5   :  { %1419 = vmatpush1.bf16.msra.mxu0 %v2582_v6  ;;  %1583 = vmatpush1.bf16.msra.mxu1 %v2585_v7  ;;  %v324_v6 = vsub.s32 3, %v2821_v43  ;;  %v313_v7 = vrot.slane %v308_v4, %v312_v2 }
  0xe6   :  { %1420 = vmatprep.subr.bf16.mxu0 %v2590_v8  ;;  %1584 = vmatprep.subr.bf16.mxu1 %v2593_v10  ;;  %v321_v8 = vrot.slane %v308_v4, %v320_v3  ;;  %v317_v10 = vrot.slane %v308_v4, %v316_v5 }
  0xe9   :  { %1421 = vmatpush1.bf16.msra.mxu0 %v2588_v11  ;;  %1585 = vmatpush1.bf16.msra.mxu1 %v2591_v12  ;;  %v325_v11 = vrot.slane %v308_v4, %v324_v6 }
  0xea   :  { %1422 = vmatprep.subr.bf16.mxu0 %v2596_v13  ;;  %1586 = vmatprep.subr.bf16.mxu1 %v2599_v14 }
  0xed   :  { %1423 = vmatpush1.bf16.msra.mxu0 %v2594_v15  ;;  %1587 = vmatpush1.bf16.msra.mxu1 %v2597_v16 }
  0xee   :  { %1424 = vmatprep.subr.bf16.mxu0 %v2602_v17  ;;  %1588 = vmatprep.subr.bf16.mxu1 %v2605_v18 }
  0xf1   :  { %1425 = vmatpush1.bf16.msra.mxu0 %v2600_v19  ;;  %1589 = vmatpush1.bf16.msra.mxu1 %v2603_v20 }
  0xf2   :  { %1426 = vmatprep.subr.bf16.mxu0 %v2608_v21  ;;  %1590 = vmatprep.subr.bf16.mxu1 %v2611_v22 }
  0xf5   :  { %1427 = vmatpush1.bf16.msra.mxu0 %v2606_v24  ;;  %1591 = vmatpush1.bf16.msra.mxu1 %v2609_v25 }
  0xf6   :  { %1437 = vmatprep.subr.bf16.mxu0 %v2615_v27  ;;  %1601 = vmatprep.subr.bf16.mxu1 %v2618_v28 }
  0xf8   :  { %1429 = vmatmul.mubr.bf16.vlgmr.msra.gmra.mrb[0].mxu0 %v109_v9  ;;  %1593 = vmatmul.mubr.bf16.vlgmr.msra.gmra.mrb[0].mxu1 %v109_v9 }
  0xf9   :  { %1438 = vmatpush1.bf16.msra.mxu0 %v2613_v29  ;;  %1602 = vmatpush1.bf16.msra.mxu1 %v2616_v30 }
  0xfa   :  { %1469 = vmatprep.mubr.bf16.mxu0 %v2753_v34  ;;  %1633 = vmatprep.mubr.bf16.mxu1 %v2753_v34  ;;  %v2208_v34 = vld [vmem:[%s2873_s4] ss:$0 sm:$0xff] }
  0xfb   :  { %2241 = vmatprep.subr.bf16.mxu0 %v2619_v31  ;;  %2263 = vmatprep.subr.bf16.mxu1 %v2620_v32 }
 0x104   :  { %2206 = vmatmul.mubr.msk.bf16.vlgmr.msra.gmra.mrb[0].mxu0 %vm1310_vm0, %v111_v35  ;;  %2207 = vmatmul.mubr.msk.bf16.vlgmr.msra.gmra.mrb[0].mxu1 %vm1310_vm0, %v111_v35 }
 0x105   :  { %2242 = vmatpush3.bf16.msra.mxu0 %v2621_v36  ;;  %2264 = vmatpush3.bf16.msra.mxu1 %v2622_v37 }
 0x106   :  { %2243 = vmatprep.subr.bf16.mxu0 %v2623_v38  ;;  %2265 = vmatprep.subr.bf16.mxu1 %v2624_v39 }
 0x109   :  { %2244 = vmatpush3.bf16.msra.mxu0 %v2625_v23  ;;  %2266 = vmatpush3.bf16.msra.mxu1 %v2626_v40 }
 0x10a   :  { %2245 = vmatprep.subr.bf16.mxu0 %v2627_v41  ;;  %2267 = vmatprep.subr.bf16.mxu1 %v2628_v42 }
 0x10d   :  { %2246 = vmatpush3.bf16.msra.mxu0 %v2629_v44  ;;  %2268 = vmatpush3.bf16.msra.mxu1 %v2630_v49 }
 0x10e   :  { %2247 = vmatprep.subr.bf16.mxu0 %v2631_v45  ;;  %2269 = vmatprep.subr.bf16.mxu1 %v2632_v46 }
 0x111   :  { %2248 = vmatpush3.bf16.msra.mxu0 %v2633_v47  ;;  %2270 = vmatpush3.bf16.msra.mxu1 %v2634_v48 }
 0x112   :  { %2249 = vmatprep.subr.bf16.mxu0 %v2635_v50  ;;  %2271 = vmatprep.subr.bf16.mxu1 %v2636_v51 }
 0x115   :  { %2250 = vmatpush3.bf16.msra.mxu0 %v2637_v52  ;;  %2272 = vmatpush3.bf16.msra.mxu1 %v2638_v53 }
 0x116   :  { %2251 = vmatprep.subr.bf16.mxu0 %v2639_v54  ;;  %2273 = vmatprep.subr.bf16.mxu1 %v2640_v55 }
 0x119   :  { %2252 = vmatpush3.bf16.msra.mxu0 %v2641_v56  ;;  %2274 = vmatpush3.bf16.msra.mxu1 %v2642_v57 }
 0x11a   :  { %2253 = vmatprep.subr.bf16.mxu0 %v2643_v58  ;;  %2275 = vmatprep.subr.bf16.mxu1 %v2644_v59 }
 0x11d   :  { %2254 = vmatpush3.bf16.msra.mxu0 %v2645_v60  ;;  %2276 = vmatpush3.bf16.msra.mxu1 %v2646_v61 }
 0x11e   :  { %2255 = vmatprep.subr.bf16.mxu0 %v2647_v62  ;;  %2277 = vmatprep.subr.bf16.mxu1 %v2648_v63 }
 0x121   :  { %2256 = vmatpush3.bf16.msra.mxu0 %v2649_v0  ;;  %2278 = vmatpush3.bf16.msra.mxu1 %v2650_v1 }
 0x1d7   :  { %v1471_v12 = vpop.f32.mrb[0].mxu0  ;;  %v1635_v13 = vpop.f32.mrb[0].mxu1 }
 0x1d8   :  { %v2285_v14 = vadd.f32 %v1471_v12, %v313_v7  ;;  %v2287_v15 = vadd.f32 %v1635_v13, %v321_v8  ;;  %v1473_v16 = vpop.f32.mrb[1].mxu0  ;;  %v1637_v17 = vpop.f32.mrb[1].mxu1 }
 0x1d9   :  { %v2286_v18 = vadd.f32 %v1473_v16, %v317_v10  ;;  %v2288_v19 = vadd.f32 %v1637_v17, %v325_v11  ;;  %v1475_v20 = vpop.f32.mrb[2].mxu0  ;;  %v1639_v21 = vpop.f32.mrb[2].mxu1 }
 0x1da   :  { %v1642_v22 = vmax.f32 %v2285_v14, 0.0  ;;  %v1644_v24 = vmax.f32 %v2287_v15, 0.0  ;;  %v1476_v25 = vpop.f32.mrb[3].mxu0  ;;  %v1640_v27 = vpop.f32.mrb[3].mxu1 }
 0x1db   :  { %v1643_v28 = vmax.f32 %v2286_v18, 0.0  ;;  %v1645_v43 = vmax.f32 %v2288_v19, 0.0 }
 0x1dc   :  { %v1646_v30 = vpack.c.bf16 %v1642_v22, %v1642_v22  ;;  %v1648_v31 = vpack.c.bf16 %v1644_v24, %v1644_v24 }
 0x1dd   :  { %v1647_v9 = vpack.c.bf16 %v1643_v28, %v1643_v28  ;;  %v1649_v29 = vpack.c.bf16 %v1645_v43, %v1645_v43 }
 0x1df   :  { %1945 = vmatprep.mubr.bf16.mxu0 %v1647_v9  ;;  %1985 = vmatprep.mubr.bf16.mxu1 %v1649_v29 }
 0x1e0   :  { %1946 = vmatmul.mubr.bf16.vlgmr.msra.gmra.mrb[4].mxu0 %v1646_v30  ;;  %1986 = vmatmul.mubr.bf16.vlgmr.msra.gmra.mrb[4].mxu1 %v1648_v31 }
 0x2b3   :  { %v2257_v32 = vpop.f32.mrb[4].mxu0  ;;  %v2279_v33 = vpop.f32.mrb[4].mxu1 }
 0x2b4   :  { %v2258_v26 = vpop.f32.mrb[5].mxu0  ;;  %v2280_v35 = vpop.f32.mrb[5].mxu1 }
 0x2b5   :  { %v2259_v36 = vadd.f32 %v2258_v26, %v2257_v32  ;;  %v2281_v37 = vadd.f32 %v2280_v35, %v2279_v33  ;;  %v2260_v38 = vpop.f32.mrb[6].mxu0  ;;  %v2282_v39 = vpop.f32.mrb[6].mxu1 }
 0x2b6   :  { %v2261_v23 = vpop.f32.mrb[7].mxu0  ;;  %v2283_v40 = vpop.f32.mrb[7].mxu1 }
 0x2b7   :  { %v1948_v41 = vadd.f32 %v2259_v36, %v2208_v34 }
 0x2b9   :  { %v1988_v42 = vadd.f32 %v2281_v37, %v1948_v41 }
 0x2bb   :  { %1993 = vst [vmem:[#allocation8] sm:$0x3] %v1988_v42 }
 0x2bc   :  { %2728 = shalt.err (!%p2725_p0)
}
 0x2bd   :  { %s2729_s12 = scalar_lea.hbm %s2874_s5, 32 }
 0x2be   :  { %p2730_p1 = scmp.ne.s32.totalorder %s2874_s5, %s2729_s12  ;;  %p2733_p2 = scmp.lt.u32.totalorder %s2729_s12, %s2874_s5 }
 0x2c0   :  { %p2735_p3 = pnand %p2733_p2, %p2730_p1 }
 0x2c2   :  { %2738 = shalt.err (!%p2735_p3)
}
 0x2c3   :  { %2003 = dma.vmem_to_hbm [thread:$0]  %s2001_s9, 32, %s2874_s5, [#allocation4]  }
 0x2c4   :  { %2743 = dma.done.wait [#allocation4], 32  }
 0x2c5   :  { %2744 = vsyncadd [#allocation4], 4294967264 }
 0x2c6   :  { %2007 = vsyncpa [#allocation3], 1 }
 0x2c7   :  { %2008 = vsyncpa [#allocation6], 1 }
 0x2c8   :  { %2009 = vsyncpa [#allocation4], 1 }

</bundles_post_ra>
